<compile_context>
chip_gen: v5e
topology: v5e:2x2
jax: 0.10.0
libtpu: 0.0.40
codegen_flags: <defaults>
</compile_context>

<pallas_src>
import functools

import numpy as np

import jax
import jax.numpy as jnp
from jax.experimental import pallas as pl
from jax.experimental.pallas import tpu as pltpu


def _round_up(x, m):
    return (x + m - 1) // m * m


def _pick_spatial_tile(s, cap=1024):
    """Spatial (lane) tile: either the full extent S, or a divisor of S that is
    a multiple of 128 and <= cap (keeps the Pallas last-dim rule and full-lane
    stores)."""
    if s <= cap or s % 128 != 0:
        return s
    best = 128
    d = 256
    while d <= cap:
        if s % d == 0:
            best = d
        d += 128
    return best


# ----------------------------- Pallas kernel ------------------------------- #
def _detect_level_kernel(x_ref, w_ref, const_ref, gxy_ref, *out_refs, with_raw):
    """One (batch item, spatial tile) of one level.

    x_ref:     (C, TS)   activations (cast to the MXU dtype in-kernel)
    w_ref:     (NR, C)   1x1-conv weight, bf16, resident across the grid
    const_ref: (NR, 8)   per-output-channel decode constants
                         cols = [bias, A, B, C, Dx, Dy, 0, 0]
    gxy_ref:   (2, TS)   grid-cell x (row 0) / y (row 1) per spatial lane
    outputs:   raw (NR, TS) [optional] and dec (NR, TS)
    Rows are the conv output channels in PyTorch order (r = a*no + o).
    """
    x = x_ref[...].astype(w_ref.dtype)                       # bf16 for the MXU
    acc = jnp.dot(w_ref[...], x, preferred_element_type=jnp.float32)   # (NR, TS)
    raw = acc + const_ref[:, 0:1]                            # + bias (lane bcast)

    if with_raw:
        raw_ref, dec_ref = out_refs
        raw_ref[...] = raw.astype(raw_ref.dtype)
    else:
        (dec_ref,) = out_refs

    sig = jax.nn.sigmoid(raw)                                # EUP

    a_c = const_ref[:, 1:2]
    b_c = const_ref[:, 2:3]
    c_c = const_ref[:, 3:4]
    dx = const_ref[:, 4:5]
    dy = const_ref[:, 5:6]
    gx = jnp.broadcast_to(gxy_ref[0:1, :], sig.shape)        # sublane bcast
    gy = jnp.broadcast_to(gxy_ref[1:2, :], sig.shape)

    # o in {0,1}: (2*sig - 0.5 + g)*stride ; o in {2,3}: 4*anchor*sig^2 ; else sig
    dec = a_c * sig + b_c * (sig * sig) + c_c + dx * gx + dy * gy
    dec_ref[...] = dec.astype(dec_ref.dtype)


# ----------------------------- Detect wrapper ------------------------------ #
class DetectPallas:
    """JAX/Pallas port of the YOLO Detect head (inference path)."""

    def __init__(self, nc, anchors, ch, strides, key, *,
                 compute_dtype=jnp.bfloat16, dec_dtype=jnp.float32,
                 return_raw=True, spatial_tile_cap=1024):
        self.nc = nc
        self.no = nc + 5
        self.nl = len(anchors)
        self.na = len(anchors[0]) // 2
        self.strides = [float(s) for s in strides]
        self.compute_dtype = compute_dtype
        self.dec_dtype = dec_dtype
        self.return_raw = return_raw          # False -> halves kernel write traffic
        self.cap = spatial_tile_cap           # keeps tiles inside v5e/v7x VMEM budgets
        self.ch = tuple(int(c) for c in ch)
        self.n_real = self.na * self.no
        self.n_rows = _round_up(self.n_real, 8)      # sublane-aligned conv-out channels
        self.anchors = jnp.asarray(anchors, jnp.float32).reshape(self.nl, self.na, 2)

        # f32 master conv params (1x1 conv: weight (out, in), bias (out,)).
        self.weights, self.biases = [], []
        for c in self.ch:
            key, kw, kb = jax.random.split(key, 3)
            scale = 1.0 / float(np.sqrt(c))
            self.weights.append(jax.random.uniform(kw, (self.n_real, c),
                                                   jnp.float32, -scale, scale))
            self.biases.append(jax.random.uniform(kb, (self.n_real,),
                                                  jnp.float32, -scale, scale))

        # Hoisted kernel-side parameters: weight (NR, C) bf16 and the per-row
        # decode-constant table [bias, A, B, C, Dx, Dy, 0, 0] with stride and
        # anchors folded in, so the kernel needs no iota/modulo/where.
        anchors_np = np.asarray(self.anchors)
        self.w_pad, self.const = [], []
        for i, c in enumerate(self.ch):
            w = np.zeros((self.n_rows, c), np.float32)
            w[:self.n_real] = np.asarray(self.weights[i])
            cst = np.zeros((self.n_rows, 8), np.float32)
            bias_np = np.asarray(self.biases[i])
            s = self.strides[i]
            for r in range(self.n_real):
                a, o = divmod(r, self.no)
                cst[r, 0] = bias_np[r]
                if o == 0:      # x: (2*sig - 0.5 + gx)*stride
                    cst[r, 1], cst[r, 3], cst[r, 4] = 2.0 * s, -0.5 * s, s
                elif o == 1:    # y: (2*sig - 0.5 + gy)*stride
                    cst[r, 1], cst[r, 3], cst[r, 5] = 2.0 * s, -0.5 * s, s
                elif o == 2:    # w: (2*sig)^2 * anchor_w
                    cst[r, 2] = 4.0 * anchors_np[i, a, 0]
                elif o == 3:    # h: (2*sig)^2 * anchor_h
                    cst[r, 2] = 4.0 * anchors_np[i, a, 1]
                else:           # obj / cls: sig
                    cst[r, 1] = 1.0
            self.w_pad.append(jnp.asarray(w).astype(compute_dtype))
            self.const.append(jnp.asarray(cst))
        self._gxy_cache = {}

    def _gxy(self, ny, nx):
        key = (ny, nx)
        if key not in self._gxy_cache:
            s = np.arange(ny * nx)
            g = np.stack([s % nx, s // nx]).astype(np.float32)   # (2, S): gx, gy
            self._gxy_cache[key] = jnp.asarray(g)
        return self._gxy_cache[key]

    def _run_level(self, x, i):
        bs, c, ny, nx = x.shape
        s_tot = ny * nx
        ts = _pick_spatial_tile(s_tot, self.cap)
        nsp = s_tot // ts
        nr = self.n_rows

        x3 = x.reshape(bs, c, s_tot)          # metadata-only reshape: stays NCHW in HBM
        gxy = self._gxy(ny, nx)

        out_shapes = [jax.ShapeDtypeStruct((bs, nr, s_tot), jnp.float32),
                      jax.ShapeDtypeStruct((bs, nr, s_tot), self.dec_dtype)]
        out_specs = [pl.BlockSpec((None, nr, ts), lambda b, j: (b, 0, j)),
                     pl.BlockSpec((None, nr, ts), lambda b, j: (b, 0, j))]
        if not self.return_raw:
            out_shapes, out_specs = out_shapes[1:], out_specs[1:]

        in_bytes = (x3.size * x3.dtype.itemsize
                    + self.w_pad[i].size * self.w_pad[i].dtype.itemsize
                    + self.const[i].size * 4 + bs * gxy.size * 4)
        out_bytes = sum(int(np.prod(o.shape)) * o.dtype.itemsize for o in out_shapes)

        outs = pl.pallas_call(
            functools.partial(_detect_level_kernel, with_raw=self.return_raw),
            out_shape=tuple(out_shapes),
            grid=(bs, nsp),
            in_specs=[
                # activations: one (c, ts) slab per (batch item, spatial tile)
                pl.BlockSpec((None, c, ts), lambda b, j: (b, 0, j)),
                # conv weight / decode constants: resident across the grid
                pl.BlockSpec((nr, c), lambda b, j: (0, 0)),
                pl.BlockSpec((nr, 8), lambda b, j: (0, 0)),
                # grid-cell coordinates per spatial lane
                pl.BlockSpec((2, ts), lambda b, j: (0, j)),
            ],
            out_specs=tuple(out_specs),
            compiler_params=pltpu.CompilerParams(
                dimension_semantics=("parallel", "parallel")),
            cost_estimate=pl.CostEstimate(
                flops=2 * bs * s_tot * c * nr,
                transcendentals=bs * nr * s_tot,
                bytes_accessed=in_bytes + out_bytes),
        )(x3, self.w_pad[i], self.const[i], gxy)
        return outs

    def __call__(self, xs):
        """xs: list of nl NCHW feature maps. Returns (z_cat, raw_list) like eval()."""
        z, raw_list = [], []
        for i, x in enumerate(xs):
            bs, c, ny, nx = x.shape
            outs = self._run_level(x, i)
            if self.return_raw:
                raw3, dec3 = outs
            else:
                dec3 = outs[0]
                raw3 = None
            # (bs, na*no, ny*nx) -> (bs, na, no, ny, nx) -> (bs, na, ny, nx, no):
            # same view/permute the PyTorch module performs (kept for layout parity).
            dec = (dec3[:, :self.n_real, :]
                   .reshape(bs, self.na, self.no, ny, nx)
                   .transpose(0, 1, 3, 4, 2))
            z.append(dec.reshape(bs, -1, self.no).astype(jnp.float32))
            if raw3 is not None:
                raw = (raw3[:, :self.n_real, :]
                       .reshape(bs, self.na, self.no, ny, nx)
                       .transpose(0, 1, 3, 4, 2))
                raw_list.append(raw)
        z_cat = jnp.concatenate(z, axis=1)
        return (z_cat, raw_list) if self.return_raw else z_cat


# ----------------------------- pure-JAX reference --------------------------- #
def _ref_forward(det, xs):
    """Reference forward; applies the same bf16 rounding to activations/weights
    that the kernel feeds the MXU, so comparisons are apples-to-apples."""
    z, raw_list = [], []
    cd = det.compute_dtype
    for i, x_nchw in enumerate(xs):
        bs, c, ny, nx = x_nchw.shape
        w = det.weights[i].astype(cd).astype(jnp.float32)
        xr = x_nchw.astype(cd).astype(jnp.float32)
        conv = jnp.einsum("bchw,oc->bohw", xr, w) + det.biases[i][None, :, None, None]
        raw = conv.reshape(bs, det.na, det.no, ny, nx).transpose(0, 1, 3, 4, 2)
        raw_list.append(raw)
        y = jax.nn.sigmoid(raw)
        yy, xx = jnp.meshgrid(jnp.arange(ny), jnp.arange(nx), indexing="ij")
        grid = jnp.stack([xx, yy], -1).reshape(1, 1, ny, nx, 2).astype(jnp.float32)
        xy = (y[..., 0:2] * 2.0 - 0.5 + grid) * det.strides[i]
        wh = (y[..., 2:4] * 2.0) ** 2 * det.anchors[i].reshape(1, det.na, 1, 1, 2)
        yd = jnp.concatenate([xy, wh, y[..., 4:]], axis=-1)
        z.append(yd.reshape(bs, -1, det.no))
    return jnp.concatenate(z, axis=1), raw_list


# ---------------------------------- main ------------------------------------ #
if __name__ == "__main__":
    key = jax.random.PRNGKey(0)
    nc = 3                                   # small class count -> no = 8
    anchors = ((10, 13, 16, 30, 33, 23),
               (30, 61, 62, 45, 59, 119),
               (116, 90, 156, 198, 373, 326))
    ch = (16, 32, 64)
    strides = (8.0, 16.0, 32.0)
    bs = 2
    spatial = (16, 8, 4)

    key, kparams = jax.random.split(key)
    det = DetectPallas(nc, anchors, ch, strides, kparams,
                       compute_dtype=jnp.bfloat16, dec_dtype=jnp.float32,
                       return_raw=True)

    xs = []
    for c, s in zip(ch, spatial):
        key, kx = jax.random.split(key)
        xs.append(jax.random.normal(kx, (bs, c, s, s), jnp.float32))

    z, raw = det(xs)
    jax.block_until_ready(z)
    for r in raw:
        jax.block_until_ready(r)

    z_ref, raw_ref = _ref_forward(det, xs)
    assert z.shape == z_ref.shape
    assert jnp.allclose(z, z_ref, atol=2e-2, rtol=2e-2), \
        float(jnp.max(jnp.abs(z - z_ref)))
    for a, b in zip(raw, raw_ref):
        assert a.shape == b.shape
        assert jnp.allclose(a, b, atol=2e-2, rtol=2e-2)

    print("KERNEL_OK")
</pallas_src>

<mosaic_0001>
module attributes {stable_mosaic.version = 11 : i64} {
  func.func @_detect_level_kernel(%arg0: i32, %arg1: i32, %arg2: memref<1x16x256xf32, #tpu.memory_space<vmem>>, %arg3: memref<24x16xbf16, #tpu.memory_space<vmem>>, %arg4: memref<24x8xf32, #tpu.memory_space<vmem>>, %arg5: memref<2x256xf32, #tpu.memory_space<vmem>>, %arg6: memref<1x24x256xf32, #tpu.memory_space<vmem>>, %arg7: memref<1x24x256xf32, #tpu.memory_space<vmem>>) attributes {dimension_semantics = [#tpu.dimension_semantics<parallel>, #tpu.dimension_semantics<parallel>], iteration_bounds = array<i64: 2, 1>, scalar_prefetch = 0 : i64, scratch_operands = 0 : i64, tpu.core_type = #tpu.core_type<tc>, window_params = [{transform_indices = @transform_0, window_bounds = array<i64: 1, 16, 256>}, {pipeline_mode = #tpu.pipeline_mode<synchronous>, transform_indices = @transform_1, window_bounds = array<i64: 24, 16>}, {pipeline_mode = #tpu.pipeline_mode<synchronous>, transform_indices = @transform_2, window_bounds = array<i64: 24, 8>}, {transform_indices = @transform_3, window_bounds = array<i64: 2, 256>}, {transform_indices = @transform_4, window_bounds = array<i64: 1, 24, 256>}, {transform_indices = @transform_5, window_bounds = array<i64: 1, 24, 256>}]} {
    %c0 = arith.constant 0 : index
    %c0_0 = arith.constant 0 : index
    %c0_1 = arith.constant 0 : index
    %0 = vector.load %arg2[%c0, %c0_0, %c0_1] : memref<1x16x256xf32, #tpu.memory_space<vmem>>, vector<1x16x256xf32>
    %1 = vector.shape_cast %0 : vector<1x16x256xf32> to vector<16x256xf32>
    %2 = arith.truncf %1 : vector<16x256xf32> to vector<16x256xbf16>
    %c0_2 = arith.constant 0 : index
    %c0_3 = arith.constant 0 : index
    %3 = vector.load %arg3[%c0_2, %c0_3] : memref<24x16xbf16, #tpu.memory_space<vmem>>, vector<24x16xbf16>
    %cst = arith.constant dense<0.000000e+00> : vector<24x256xf32>
    %4 = tpu.matmul %3, %2, %cst {dimension_numbers = #tpu.dot_dimension_numbers<[1], [0], [0], [1], [0, 0, 1, 1], [], []>} : vector<24x16xbf16>, vector<16x256xbf16>, vector<24x256xf32> -> vector<24x256xf32>
    %c0_4 = arith.constant 0 : index
    %c0_5 = arith.constant 0 : index
    %5 = vector.load %arg4[%c0_4, %c0_5] : memref<24x8xf32, #tpu.memory_space<vmem>>, vector<24x1xf32>
    %6 = vector.broadcast %5 : vector<24x1xf32> to vector<24x256xf32>
    %7 = arith.addf %4, %6 : vector<24x256xf32>
    %c0_6 = arith.constant 0 : index
    %c0_7 = arith.constant 0 : index
    %c0_8 = arith.constant 0 : index
    %8 = vector.load %arg6[%c0_6, %c0_7, %c0_8] : memref<1x24x256xf32, #tpu.memory_space<vmem>>, vector<1x24x256xf32>
    %9 = vector.shape_cast %8 : vector<1x24x256xf32> to vector<24x256xf32>
    %10 = vector.shape_cast %7 : vector<24x256xf32> to vector<1x24x256xf32>
    tpu.vector_store %arg6[%c0_6, %c0_7, %c0_8], %10 {strides = array<i32>} : memref<1x24x256xf32, #tpu.memory_space<vmem>>, vector<1x24x256xf32>,
    %11 = arith.negf %7 : vector<24x256xf32>
    %12 = math.exp %11 : vector<24x256xf32>
    %cst_9 = arith.constant 1.000000e+00 : f32
    %13 = vector.broadcast %cst_9 : f32 to vector<24x256xf32>
    %14 = arith.addf %13, %12 : vector<24x256xf32>
    %15 = arith.divf %13, %14 : vector<24x256xf32>
    %c0_10 = arith.constant 0 : index
    %c1 = arith.constant 1 : index
    %16 = vector.load %arg4[%c0_10, %c1] : memref<24x8xf32, #tpu.memory_space<vmem>>, vector<24x1xf32>
    %c0_11 = arith.constant 0 : index
    %c2 = arith.constant 2 : index
    %17 = vector.load %arg4[%c0_11, %c2] : memref<24x8xf32, #tpu.memory_space<vmem>>, vector<24x1xf32>
    %c0_12 = arith.constant 0 : index
    %c3 = arith.constant 3 : index
    %18 = vector.load %arg4[%c0_12, %c3] : memref<24x8xf32, #tpu.memory_space<vmem>>, vector<24x1xf32>
    %c0_13 = arith.constant 0 : index
    %c4 = arith.constant 4 : index
    %19 = vector.load %arg4[%c0_13, %c4] : memref<24x8xf32, #tpu.memory_space<vmem>>, vector<24x1xf32>
    %c0_14 = arith.constant 0 : index
    %c5 = arith.constant 5 : index
    %20 = vector.load %arg4[%c0_14, %c5] : memref<24x8xf32, #tpu.memory_space<vmem>>, vector<24x1xf32>
    %c0_15 = arith.constant 0 : index
    %c0_16 = arith.constant 0 : index
    %21 = vector.load %arg5[%c0_15, %c0_16] : memref<2x256xf32, #tpu.memory_space<vmem>>, vector<1x256xf32>
    %22 = vector.shape_cast %21 : vector<1x256xf32> to vector<1x256xf32>
    %23 = vector.broadcast %22 : vector<1x256xf32> to vector<24x256xf32>
    %c1_17 = arith.constant 1 : index
    %c0_18 = arith.constant 0 : index
    %24 = vector.load %arg5[%c1_17, %c0_18] : memref<2x256xf32, #tpu.memory_space<vmem>>, vector<1x256xf32>
    %25 = vector.shape_cast %24 : vector<1x256xf32> to vector<1x256xf32>
    %26 = vector.broadcast %25 : vector<1x256xf32> to vector<24x256xf32>
    %27 = vector.broadcast %16 : vector<24x1xf32> to vector<24x256xf32>
    %28 = arith.mulf %27, %15 : vector<24x256xf32>
    %29 = arith.mulf %15, %15 : vector<24x256xf32>
    %30 = vector.broadcast %17 : vector<24x1xf32> to vector<24x256xf32>
    %31 = arith.mulf %30, %29 : vector<24x256xf32>
    %32 = arith.addf %28, %31 : vector<24x256xf32>
    %33 = vector.broadcast %18 : vector<24x1xf32> to vector<24x256xf32>
    %34 = arith.addf %32, %33 : vector<24x256xf32>
    %35 = vector.broadcast %19 : vector<24x1xf32> to vector<24x256xf32>
    %36 = arith.mulf %35, %23 : vector<24x256xf32>
    %37 = arith.addf %34, %36 : vector<24x256xf32>
    %38 = vector.broadcast %20 : vector<24x1xf32> to vector<24x256xf32>
    %39 = arith.mulf %38, %26 : vector<24x256xf32>
    %40 = arith.addf %37, %39 : vector<24x256xf32>
    %c0_19 = arith.constant 0 : index
    %c0_20 = arith.constant 0 : index
    %c0_21 = arith.constant 0 : index
    %41 = vector.load %arg7[%c0_19, %c0_20, %c0_21] : memref<1x24x256xf32, #tpu.memory_space<vmem>>, vector<1x24x256xf32>
    %42 = vector.shape_cast %41 : vector<1x24x256xf32> to vector<24x256xf32>
    %43 = vector.shape_cast %40 : vector<24x256xf32> to vector<1x24x256xf32>
    tpu.vector_store %arg7[%c0_19, %c0_20, %c0_21], %43 {strides = array<i32>} : memref<1x24x256xf32, #tpu.memory_space<vmem>>, vector<1x24x256xf32>,
    return
  }
  func.func @transform_0(%arg0: i32, %arg1: i32) -> (i32, i32, i32) {
    %c0_i32 = arith.constant 0 : i32
    %c0_i32_0 = arith.constant 0 : i32
    return %arg0, %c0_i32, %arg1 : i32, i32, i32
  }
  func.func @transform_1(%arg0: i32, %arg1: i32) -> (i32, i32) {
    %c0_i32 = arith.constant 0 : i32
    %c0_i32_0 = arith.constant 0 : i32
    %c0_i32_1 = arith.constant 0 : i32
    return %c0_i32, %c0_i32_0 : i32, i32
  }
  func.func @transform_2(%arg0: i32, %arg1: i32) -> (i32, i32) {
    %c0_i32 = arith.constant 0 : i32
    %c0_i32_0 = arith.constant 0 : i32
    %c0_i32_1 = arith.constant 0 : i32
    return %c0_i32, %c0_i32_0 : i32, i32
  }
  func.func @transform_3(%arg0: i32, %arg1: i32) -> (i32, i32) {
    %c0_i32 = arith.constant 0 : i32
    %c0_i32_0 = arith.constant 0 : i32
    return %c0_i32, %arg1 : i32, i32
  }
  func.func @transform_4(%arg0: i32, %arg1: i32) -> (i32, i32, i32) {
    %c0_i32 = arith.constant 0 : i32
    %c0_i32_0 = arith.constant 0 : i32
    return %arg0, %c0_i32, %arg1 : i32, i32, i32
  }
  func.func @transform_5(%arg0: i32, %arg1: i32) -> (i32, i32, i32) {
    %c0_i32 = arith.constant 0 : i32
    %c0_i32_0 = arith.constant 0 : i32
    return %arg0, %c0_i32, %arg1 : i32, i32, i32
  }
}

</mosaic_0001>

<bundles_post_ra>
// kernel: tpu_custom_call.1
= control target key start
LH: loop header
LB: loop body
LE: loop exit
PB: predicated region body
PF: predicated region fallthrough
CT: control target
= control target key end

     0   :  { %11 = vsyncpa [#allocation3], 0  ;;  %s1537_s0 = inlined_call_operand.hbm [shape: f32[2,16,256], index: 0, kind: input, shape index: {}]   ;;  %s1538_s1 = inlined_call_operand.vmem [shape: bf16[24,16], index: 1, kind: input, shape index: {}]   ;;  %s1539_s2 = inlined_call_operand.vmem [shape: f32[24,8], index: 2, kind: input, shape index: {}]   ;;  %s1540_s3 = inlined_call_operand.vmem [shape: f32[2,256], index: 3, kind: input, shape index: {}]   ;;  %s1541_s4 = inlined_call_operand.hbm [shape: f32[2,24,256], index: 4, kind: output, shape index: {0}]   ;;  %s1542_s5 = inlined_call_operand.hbm [shape: f32[2,24,256], index: 5, kind: output, shape index: {1}]  }
   0x1   :  { %13 = vsyncpa [#allocation3 + $0x1], 0 }
   0x2   :  { %14 = vsyncpa [#allocation4], 0 }
   0x3   :  { %16 = vsyncpa [#allocation4 + $0x1], 0 }
   0x4   :  { %17 = vsyncpa [#allocation7], 0 }
   0x5   :  { %19 = vsyncpa [#allocation7 + $0x1], 0  ;;  %s1157_s18 = smov 0   ;;  %s1159_s19 = smov 0  }
   0x6   :  { %s1161_s20 = smov 0   ;;  %s1163_s21 = smov 0  }
   0x7   :  { %s1165_s22 = smov 0   ;;  %s1167_s23 = smov 0  }
   0x8 LB: > { %s819_s24 = sadd.s32 4294967295, %s1115_s23   ;;  %s820_s25 = sadd.s32 4294967294, %s1115_s23   ;;  %s1115_s23 = sphi %s1167_s23, %s25_s23   ;;  %s1111_s22 = sphi %s1165_s22, %s1567_s22   ;;  %s1107_s21 = sphi %s1163_s21, %s1566_s21   ;;  %s1103_s20 = sphi %s1161_s20, %s1565_s20   ;;  %s1099_s19 = sphi %s1159_s19, %s1564_s19   ;;  %s1095_s18 = sphi %s1157_s18, %s1563_s18  }
   0x9   : > { %s37_s26 = sadd.s32 1, %s1111_s22  ;;  %s46_s27 = sadd.s32 1, %s1103_s20 }
   0xa   : > { %p39_p0 = scmp.ge.s32.totalorder %s37_s26, 2  ;;  %p53_p1 = scmp.ne.s32.totalorder %s1103_s20, %s1099_s19 }
   0xb   : > { %p54_p2 = scmp.eq.s32.totalorder %s1115_s23, 0  ;;  %p59_p3 = scmp.ne.s32.totalorder %s1099_s19, %s1095_s18 }
   0xc   : > { %s1569_s26 = smov (%p39_p0, %s37_s26), 0  ;;  %p60_p5 = scmp.eq.s32.totalorder %s819_s24, 0 }
   0xd   : > { %p1198_p4 = por %p54_p2, %p53_p1  ;;  %s41_s29 = ssub.s32 %s1111_s22, %s1569_s26 }
   0xe   : > { %p153_p6 = scmp.eq.s32.totalorder %s819_s24, 1  ;;  %p44_p7 = scmp.eq.s32.totalorder %s41_s29, 0 }
   0xf   : > { %p1204_p8 = por %p60_p5, %p59_p3  ;;  %p159_p10 = scmp.eq.s32.totalorder %s820_s25, 1 }
  0x10   : > { %p1208_p9 = por %p153_p6, %p53_p1  ;;  %p823_p12 = scmp.ge.s32.totalorder %s1115_s23, 2 }
  0x11   : > { %s1213_s7 = scalar_select %p44_p7, %s1103_s20, %s46_s27  }
  0x12   : > { %p1215_p11 = por %p159_p10, %p59_p3  ;;  %p872_p13 = scmp.lt.s32.totalorder %s1115_s23, 2 }
  0x13   : > { %s222_s9 = sand.u32 1, %s1103_s20   ;;  %s848_s11 = sshll.u32 %s1111_s22, 5 }
  0x14   : > { %s824_s10 = sshll.u32 %s222_s9, 5  ;;  %s233_s14 = scalar_lea.hbm %s1537_s0, %s848_s11 }
  0x15   : > { %s226_s15 = scalar_lea.vmem [#allocation2], %s824_s10  ;;  %s234_s17 = sshll.u32 %s233_s14, 4  ;;  %s235_s17 = int_to_ptr.hbm [resolvable:$true] %s234_s17 }
  0x16   : > { %s236_s16 = sshll.u32 %s226_s15, 4  ;;  %p862_p0 = pnand %p872_p13, %p1198_p4  ;;  %s237_s16 = int_to_ptr.vmem [resolvable:$true] %s236_s16 }
  0x17   : > { %p827_p1 = scmp.ge.s32.totalorder %s1115_s23, 1  ;;  %s223_s24 = scalar_lea.sflag [#allocation3], %s222_s9 }
  0x18   : > { %s1117_s25 = smov 256   ;;  %s1118_s27 = smov 16  }
  0x19   : > { %864 = dma.hbm_to_vmem [thread:$0]  (!%p862_p0), %s235_s17, 512, %s237_s16, %s223_s24, %s1117_s25, %s1117_s25, %s1118_s27  }
  0x1a   : > { %p244_p2 = scmp.lt.s32.totalorder %s1115_s23, 3 }
  0x1c   : > { %p245_p3 = pnand %p827_p1, %p244_p2 }
  0x1d   : > { %s1231_s29 = sand.u32 (!%p245_p3), 1, %s1099_s19  }
  0x1e   : > { %248 = sbr.rel (%p245_p3) target bundleno = 226 (0xe2), region = 36  ;;  %s828_s10 = sshll.u32 (!%p245_p3), %s1231_s29, 5 }
  0x1f   : > { %s251_s11 = scalar_lea.sflag (!%p245_p3), [#allocation3], %s1231_s29  ;;  %s254_s12 = scalar_lea.vmem (!%p245_p3), [#allocation2], %s828_s10 }
  0x23   : > { %1082 = dma.done.wait (%p1204_p8), %s251_s11, 512  }
  0x24   : > { %1084 = vsyncadd (%p1204_p8), %s251_s11, 4294966784  ;;  %v1119_v0 = vmov 0   ;;  %v1120_v1 = vmov 1   ;;  %v313_v2 = vld [vmem:[%s1539_s2 + $0x10] sm:$0xff]  ;;  %v302_v3 = vld [vmem:[%s254_s12] sm:$0xff]  ;;  %vm337_vm0 = vcmask 130048  }
  0x25   : > { %933 = vset.pattern.permute.xlu1 %v1119_v0  ;;  %932 = vset.pattern.permute.xlu0 %v1119_v0  ;;  %v304_v4 = vld [vmem:[%s254_s12 + $0x10] sm:$0xff]  ;;  %v303_v6 = vld [vmem:[%s254_s12 + $0x8] sm:$0xff]  ;;  %v305_v7 = vld [vmem:[%s254_s12 + $0x18] sm:$0xff]  ;;  %v1121_v15 = vmov 2   ;;  %v1122_v16 = vmov 3   ;;  %v1123_v17 = vmov 4  }
  0x26   : > { %935 = vset.pattern.permute.xlu2 %v1120_v1  ;;  %326 = vperm.xlu1 %933, %v313_v2   ;;  %v306_v5 = vpack.c.bf16 %v304_v4, %v302_v3  ;;  %v307_v8 = vpack.c.bf16 %v305_v7, %v303_v6  ;;  %v849_v9 = vld [vmem:[%s1538_s1] sm:$0xff]  ;;  %v310_v10 = vld [vmem:[%s1538_s1 + $0x8] sm:$0xf]  ;;  %v1124_v18 = vmov 5   ;;  %s852_s27 = smul.u32 48, %s1231_s29  ;;  %s640_s30 = scalar_lea.sflag [#allocation4], %s1231_s29 }
  0x27   : > { %v311_v11 = vld [vmem:[%s1539_s2] sm:$0xff]  ;;  %v334_v12 = vunpack.c.l.b16 %v310_v10  ;;  %v312_v13 = vld [vmem:[%s1539_s2 + $0x8] sm:$0xff]  ;;  %s853_s10 = smul.u32 48, %s1107_s21  ;;  %s1021_s25 = scalar_lea.hbm %s1541_s4, 96 }
  0x28   : > { %351 = vmatpush.bf16.msra.mxu0 %v306_v5  ;;  %850 = vmatpush.bf16.msra.mxu2 %v306_v5  ;;  %s1270_s11 = scalar_lea.vmem [#allocation5], %s852_s27 }
  0x29   : > { %369 = vmatpush.bf16.msra.mxu1 %v307_v8  ;;  %851 = vmatpush.bf16.msra.mxu3 %v307_v8  ;;  %v336_v14 = vpack.c.b16 %v334_v12, %v334_v12  ;;  %s658_s9 = scalar_lea.hbm %s1541_s4, %s853_s10  ;;  %s659_s13 = sshll.u32 %s1270_s11, 4  ;;  %s1280_s13 = int_to_ptr.vmem [resolvable:$true] %s659_s13 }
  0x2a   : > { %316 = vperm.xlu0 %932, %v311_v11   ;;  %523 = vperm.xlu2 %935, %v312_v13   ;;  %s661_s14 = sshll.u32 %s658_s9, 4  ;;  %s1286_s14 = int_to_ptr.hbm [resolvable:$true] %s661_s14 }
  0x2b   : > { %833 = vmatmul.msk.bf16.vlgmr.msra.gmra.mxu0 %vm337_vm0, %v849_v9  ;;  %834 = vmatmul.msk.bf16.vlgmr.msra.gmra.mxu2 %vm337_vm0, %v336_v14  ;;  %s1015_s15 = sshra.s32 %s1286_s14, 4  ;;  %s1016_s15 = int_to_ptr.hbm [resolvable:$true] %s1015_s15 }
  0x2c   : > { %835 = vmatmul.msk.bf16.vlgmr.msra.gmra.mxu1 %vm337_vm0, %v849_v9  ;;  %836 = vmatmul.msk.bf16.vlgmr.msra.gmra.mxu3 %vm337_vm0, %v336_v14  ;;  %s1017_s16 = scalar_lea.hbm %s1016_s15, 48  ;;  %p1022_p7 = scmp.lt.s32.totalorder %s1016_s15, %s1541_s4 }
  0x2d   : > { %p1018_p4 = scmp.ne.s32.totalorder %s1016_s15, %s1017_s16  ;;  %p1023_p8 = scmp.lt.s32.totalorder %s1021_s25, %s1017_s16 }
  0x2e   : > { %934 = vset.pattern.permute.xlu1 %v1120_v1 }
  0x2f   : > { %518 = vperm.xlu1 %934, %v311_v11   ;;  %p1019_p5 = pnand %p1018_p4, %p1208_p9  ;;  %p1024_p10 = por %p1023_p8, %p1022_p7 }
  0x31   : > { %p1020_p6 = pneg %p1019_p5 }
  0x32   : > { %321 = vperm.xlu0 %932, %v312_v13   ;;  %528 = vperm.xlu2 %935, %v313_v2  }
  0x33   : > { %p1025_p13 = pnand %p1024_p10, %p1020_p6 }
  0x37   : > { %937 = vset.pattern.permute.xlu1 %v1121_v15 }
  0x38   : > { %548 = vperm.xlu1 %937, %v312_v13  }
  0x3a   : > { %936 = vset.pattern.permute.xlu0 %v1121_v15  ;;  %938 = vset.pattern.permute.xlu2 %v1121_v15 }
  0x3b   : > { %544 = vperm.xlu0 %936, %v311_v11   ;;  %552 = vperm.xlu2 %938, %v313_v2  }
  0x40   : > { %939 = vset.pattern.permute.xlu1 %v1122_v16 }
  0x41   : > { %568 = vperm.xlu1 %939, %v311_v11  }
  0x43   : > { %941 = vset.pattern.permute.xlu0 %v1122_v16  ;;  %940 = vset.pattern.permute.xlu2 %v1122_v16 }
  0x44   : > { %576 = vperm.xlu0 %941, %v313_v2   ;;  %572 = vperm.xlu2 %940, %v312_v13  }
  0x49   : > { %942 = vset.pattern.permute.xlu1 %v1123_v17 }
  0x4a   : > { %586 = vperm.xlu1 %942, %v311_v11  }
  0x4c   : > { %945 = vset.pattern.permute.xlu0 %v1124_v18  ;;  %943 = vset.pattern.permute.xlu2 %v1123_v17 }
  0x4d   : > { %614 = vperm.xlu0 %945, %v312_v13   ;;  %590 = vperm.xlu2 %943, %v312_v13  }
  0x52   : > { %594 = vperm.xlu1 %942, %v313_v2  }
  0x55   : > { %944 = vset.pattern.permute.xlu2 %v1124_v18 }
  0x56   : > { %610 = vperm.xlu2 %944, %v311_v11  }
  0x5a   : > { %946 = vset.pattern.permute.xlu1 %v1124_v18 }
  0x5b   : > { %618 = vperm.xlu1 %946, %v313_v2  }
  0x84   : > { %v1254_v19 = vpop.permute.xlu2 %523 }
  0x8c   : > { %v1256_v21 = vpop.permute.xlu2 %528 }
  0x95   : > { %v1258_v22 = vpop.permute.xlu2 %552 }
  0x98   : > { %v327_v20 = vpop.permute.xlu1 %326 }
  0x9c   : > { %v317_v24 = vpop.permute.xlu0 %316 }
  0x9e   : > { %v1266_v30 = vpop.permute.xlu2 %572 }
  0xa1   : > { %v1260_v23 = vpop.permute.xlu1 %518 }
  0xa4   : > { %v322_v33 = vpop.permute.xlu0 %321 }
  0xa7   : > { %v591_v47 = vpop.permute.xlu2 %590 }
  0xa8   : > { %v353_v25 = vpop.f32.mrf.mxu0 }
  0xa9   : > { %v354_v26 = vadd.f32 %v353_v25, %v317_v24  ;;  %v371_v27 = vpop.f32.mrf.mxu1 }
  0xaa   : > { %v372_v28 = vadd.f32 %v371_v27, %v317_v24  ;;  %v1264_v29 = vpop.permute.xlu1 %548 }
  0xab   : > { %380 = vst [vmem:[%s1270_s11] sm:$0xff] %v354_v26  ;;  %v837_v31 = vmul.f32 -1.442695, %v354_v26 }
  0xac   : > { %381 = vst [vmem:[%s1270_s11 + $0x8] sm:$0xff] %v372_v28  ;;  %v838_v32 = vmul.f32 -1.442695, %v372_v28 }
  0xad   : > { %947 = vpow2.f32 %v837_v31 }
  0xae   : > { %949 = vpow2.f32 %v838_v32  ;;  %v358_v34 = vpop.f32.mrf.mxu2 }
  0xaf   : > { %v359_v35 = vadd.f32 %v358_v34, %v327_v20  ;;  %v376_v36 = vpop.f32.mrf.mxu3 }
  0xb0   : > { %v355_v37 = vpop.f32.mrf.mxu0  ;;  %v377_v38 = vadd.f32 %v376_v36, %v327_v20 }
  0xb1   : > { %v356_v39 = vadd.f32 %v355_v37, %v322_v33  ;;  %v373_v40 = vpop.f32.mrf.mxu1  ;;  %384 = vst [vmem:[%s1270_s11 + $0x20] sm:$0xff] %v359_v35  ;;  %v841_v41 = vmul.f32 -1.442695, %v359_v35 }
  0xb2   : > { %v374_v42 = vadd.f32 %v373_v40, %v322_v33  ;;  %385 = vst [vmem:[%s1270_s11 + $0x28] sm:$0xff] %v377_v38  ;;  %v842_v44 = vmul.f32 -1.442695, %v377_v38 }
  0xb3   : > { %v948_v43 = vpop.eup %947  ;;  %v1284_v45 = vpop.permute.xlu1 %568  ;;  %951 = vpow2.f32 %v841_v41  ;;  %382 = vst [vmem:[%s1270_s11 + $0x10] sm:$0xff] %v356_v39  ;;  %v839_v46 = vmul.f32 -1.442695, %v356_v39 }
  0xb4   : > { %v950_v48 = vpop.eup %949  ;;  %953 = vpow2.f32 %v842_v44  ;;  %383 = vst [vmem:[%s1270_s11 + $0x18] sm:$0xff] %v374_v42  ;;  %v840_v49 = vmul.f32 -1.442695, %v374_v42  ;;  %v1290_v50 = vadd.f32 1.0, %v948_v43 }
  0xb5   : > { %1028 = shalt.err (!%p1025_p13)
}
  0xb6   : > { %s1125_s11 = smov 256   ;;  %s1126_s9 = smov 16   ;;  %v360_v51 = vpop.f32.mrf.mxu2  ;;  %v1309_v52 = vadd.f32 1.0, %v950_v48  ;;  %955 = vpow2.f32 %v839_v46  ;;  %v503_v55 = vld [vmem:[%s1540_s3] ss:$2 sm:$0x3]  ;;  %v611_v6 = vpop.permute.xlu2 %610  ;;  %vm415_vm1 = vweird.f32 %v1290_v50 }
  0xb7   : > { %857 = dma.vmem_to_hbm [thread:$0]  (%p1208_p9), %s1280_s13, 768, %s1286_s14, %s640_s30, %s1125_s11, %s1125_s11, %s1126_s9   ;;  %v378_v53 = vpop.f32.mrf.mxu3  ;;  %957 = vpow2.f32 %v840_v49  ;;  %v421_v59 = vand.u32 2147483648, %v1290_v50  ;;  %v1326_v62 = vperm.slane %v503_v55, 0  ;;  %v1328_v63 = vperm.slane %v503_v55, 1  ;;  %v1341_v11 = vpop.permute.xlu0 %544 }
  0xb8   : > { %959 = vrcp.f32 %v1290_v50  ;;  %v843_v56 = vld [vmem:[%s1540_s3 + $0x1] ss:$2 sm:$0x3]  ;;  %v436_v61 = vand.u32 2147483648, %v1309_v52  ;;  %v419_v3 = vand.u32 2147483647, %v1290_v50  ;;  %s677_s30 = scalar_lea.hbm %s1542_s5, %s853_s10 }
  0xb9   : > { %v952_v54 = vpop.eup %951  ;;  %961 = vrcp.f32 %v1309_v52  ;;  %v1330_v1 = vperm.slane %v843_v56, 0  ;;  %v434_v4 = vand.u32 2147483647, %v1309_v52  ;;  %v1335_v5 = vperm.slane %v843_v56, 1  ;;  %s291_s25 = scalar_lea.vmem [#allocation6], %s852_s27  ;;  %s680_s21 = sshll.u32 %s677_s30, 4  ;;  %s681_s21 = int_to_ptr.hbm [resolvable:$true] %s680_s21 }
  0xba   : > { %v954_v57 = vpop.eup %953  ;;  %v1318_v58 = vadd.f32 1.0, %v952_v54  ;;  %v1343_v12 = vor.u32 1.1754944e-38, %v421_v59  ;;  %v1350_v16 = vor.u32 1.1754944e-38, %v436_v61  ;;  %v1353_v17 = vmul.f32 %v591_v47, %v1326_v62  ;;  %s678_s12 = sshll.u32 %s291_s25, 4  ;;  %s645_s27 = scalar_lea.sflag [#allocation7], %s1231_s29  ;;  %s679_s12 = int_to_ptr.vmem [resolvable:$true] %s678_s12 }
  0xbb   : > { %v1322_v60 = vadd.f32 1.0, %v954_v57  ;;  %v1359_v20 = vmul.f32 %v591_v47, %v1328_v63  ;;  %v1362_v24 = vmul.f32 %v611_v6, %v1330_v1  ;;  %v1370_v27 = vmul.f32 %v611_v6, %v1335_v5  ;;  %s1043_s10 = sshra.s32 %s681_s21, 4  ;;  %s1049_s17 = scalar_lea.hbm %s1542_s5, 96  ;;  %s1044_s10 = int_to_ptr.hbm [resolvable:$true] %s1043_s10 }
  0xbc   : > { %963 = vrcp.f32 %v1318_v58  ;;  %v587_v0 = vpop.permute.xlu1 %586  ;;  %v956_v2 = vpop.eup %955  ;;  %v481_v9 = vand.u32 2147483648, %v1318_v58  ;;  %v479_v15 = vand.u32 2147483647, %v1318_v58  ;;  %vm475_vm2 = vweird.f32 %v1318_v58  ;;  %s1045_s28 = scalar_lea.hbm %s1044_s10, 48  ;;  %p1050_p3 = scmp.lt.s32.totalorder %s1044_s10, %s1542_s5 }
  0xbd   : > { %965 = vrcp.f32 %v1322_v60  ;;  %v958_v7 = vpop.eup %957  ;;  %v1337_v8 = vadd.f32 1.0, %v956_v2  ;;  %v496_v10 = vand.u32 2147483648, %v1322_v60  ;;  %v494_v18 = vand.u32 2147483647, %v1322_v60  ;;  %p1046_p0 = scmp.ne.s32.totalorder %s1044_s10, %s1045_s28  ;;  %p1051_p4 = scmp.lt.s32.totalorder %s1049_s17, %s1045_s28 }
  0xbe   : > { %v1345_v13 = vpop.eup %959  ;;  %v1347_v14 = vadd.f32 1.0, %v958_v7  ;;  %v482_v31 = vor.u32 1.1754944e-38, %v481_v9  ;;  %vm490_vm3 = vweird.f32 %v1322_v60  ;;  %v1374_v33 = vmul.f32 %v587_v0, %v1326_v62 }
  0xbf   : > { %967 = vrcp.f32 %v1337_v8  ;;  %v1364_v25 = vpop.eup %961  ;;  %v451_v26 = vand.u32 2147483648, %v1337_v8  ;;  %v497_v32 = vor.u32 1.1754944e-38, %v496_v10  ;;  %v411_v34 = vmul.f32 %v1345_v13, %v1290_v50  ;;  %v1421_v10 = vpop.permute.xlu0 %576  ;;  %p1047_p1 = pnand %p1046_p0, %p1208_p9  ;;  %p1052_p5 = por %p1051_p4, %p1050_p3 }
  0xc0   : > { %969 = vrcp.f32 %v1347_v14  ;;  %vm1378_vm4 = vcmp.eq.f32.partialorder %v419_v3, 8.507059e+37  ;;  %vm1383_vm5 = vcmp.eq.f32.partialorder %v479_v15, 8.507059e+37  ;;  %v1388_v39 = vmul.f32 %v587_v0, %v1328_v63 }
  0xc1   : > { %v449_v40 = vand.u32 2147483647, %v1337_v8  ;;  %v466_v41 = vand.u32 2147483648, %v1347_v14  ;;  %vm1394_vm7 = vcmp.eq.f32.partialorder %v494_v18, 8.507059e+37  ;;  %v464_v44 = vand.u32 2147483647, %v1347_v14  ;;  %p1048_p2 = pneg %p1047_p1 }
  0xc2   : > { %v964_v28 = vpop.eup %963  ;;  %v412_v46 = vsub.f32 1.0, %v411_v34  ;;  %v426_v47 = vmul.f32 %v1364_v25, %v1309_v52  ;;  %v452_v49 = vor.u32 1.1754944e-38, %v451_v26  ;;  %vm416_vm9 = vweird.f32 %v1345_v13 }
  0xc3   : > { %v966_v36 = vpop.eup %965  ;;  %v471_v37 = vmul.f32 %v964_v28, %v1318_v58  ;;  %vm1403_vm10 = vcmp.eq.f32.partialorder %v434_v4, 8.507059e+37  ;;  %vm476_vm11 = vweird.f32 %v964_v28  ;;  %vm1410_vm14 = vcmp.eq.f32.partialorder %v449_v40, 8.507059e+37  ;;  %vm417_vm12 = vmor %vm415_vm1, %vm416_vm9  ;;  %p1053_p6 = pnand %p1052_p5, %p1048_p2 }
  0xc4   : > { %v486_v42 = vmul.f32 %v966_v36, %v1322_v60  ;;  %v413_v55 = vmul.f32 %v1345_v13, %v412_v46  ;;  %v427_v56 = vsub.f32 1.0, %v426_v47  ;;  %v595_v57 = vpop.permute.xlu1 %594  ;;  %vm491_vm13 = vweird.f32 %v966_v36  ;;  %vm477_vm8 = vmor %vm475_vm2, %vm476_vm11 }
  0xc5   : > { %v472_v48 = vsub.f32 1.0, %v471_v37  ;;  %v968_v53 = vpop.eup %967  ;;  %v467_v3 = vor.u32 1.1754944e-38, %v466_v41  ;;  %vm1415_vm15 = vcmp.eq.f32.partialorder %v464_v44, 8.507059e+37  ;;  %v1429_v34 = vmul.f32 %v595_v57, %v1326_v62  ;;  %vm492_vm0 = vmor %vm490_vm3, %vm491_vm13 }
  0xc6   : > { %v487_v54 = vsub.f32 1.0, %v486_v42  ;;  %v970_v59 = vpop.eup %969  ;;  %v441_v61 = vmul.f32 %v968_v53, %v1337_v8  ;;  %v414_v9 = vadd.f32 %v1345_v13, %v413_v55  ;;  %v428_v26 = vmul.f32 %v1364_v25, %v427_v56 }
  0xc7   : > { %v473_v0 = vmul.f32 %v964_v28, %v472_v48  ;;  %v456_v4 = vmul.f32 %v970_v59, %v1347_v14  ;;  %vm446_vm6 = vweird.f32 %v968_v53  ;;  %vm461_vm1 = vweird.f32 %v970_v59 }
  0xc8   : > { %v488_v6 = vmul.f32 %v966_v36, %v487_v54  ;;  %v442_v18 = vsub.f32 1.0, %v441_v61  ;;  %v418_v41 = vsel %vm417_vm12, %v1345_v13, %v414_v9  ;;  %v429_v44 = vadd.f32 %v1364_v25, %v428_v26 }
  0xc9   : > { %v474_v15 = vadd.f32 %v964_v28, %v473_v0  ;;  %v457_v40 = vsub.f32 1.0, %v456_v4  ;;  %v423_v62 = vsel %vm1378_vm4, %v1343_v12, %v418_v41  ;;  %vm1559_vm2 = vweird.f32 %v1364_v25 }
  0xca   : > { %v489_v37 = vadd.f32 %v966_v36, %v488_v6  ;;  %v443_v50 = vmul.f32 %v968_v53, %v442_v18  ;;  %vm1561_vm3 = vweird.f32 %v1337_v8  ;;  %v537_v38 = vmul.f32 %v423_v62, %v423_v62 }
  0xcb   : > { %v478_v42 = vsel %vm477_vm8, %v964_v28, %v474_v15  ;;  %v458_v47 = vmul.f32 %v970_v59, %v457_v40  ;;  %vm1560_vm8 = vweird.f32 %v1309_v52  ;;  %vm447_vm4 = vmor %vm1561_vm3, %vm446_vm6  ;;  %v602_v0 = vmul.f32 %v595_v57, %v1328_v63 }
  0xcc   : > { %v483_v58 = vsel %vm1383_vm5, %v482_v31, %v478_v42  ;;  %v493_v46 = vsel %vm492_vm0, %v966_v36, %v489_v37  ;;  %vm432_vm9 = vmor %vm1560_vm8, %vm1559_vm2  ;;  %v444_v28 = vadd.f32 %v968_v53, %v443_v50  ;;  %vm1562_vm5 = vweird.f32 %v1347_v14 }
  0xcd   : > { %v498_v60 = vsel %vm1394_vm7, %v497_v32, %v493_v46  ;;  %v541_v13 = vmul.f32 %v483_v58, %v483_v58  ;;  %v433_v12 = vsel %vm432_vm9, %v1364_v25, %v429_v44  ;;  %v459_v31 = vadd.f32 %v970_v59, %v458_v47  ;;  %vm462_vm7 = vmor %vm1562_vm5, %vm461_vm1  ;;  %v619_v6 = vpop.permute.xlu1 %618 }
  0xce   : > { %v542_v35 = vmul.f32 %v498_v60, %v498_v60  ;;  %v438_v36 = vsel %vm1403_vm10, %v1350_v16, %v433_v12  ;;  %v448_v48 = vsel %vm447_vm4, %v968_v53, %v444_v28  ;;  %v531_v32 = vmul.f32 %v1260_v23, %v423_v62 }
  0xcf   : > { %v559_v52 = vmul.f32 %v1258_v22, %v541_v13  ;;  %v538_v25 = vmul.f32 %v438_v36, %v438_v36  ;;  %v453_v43 = vsel %vm1410_vm14, %v452_v49, %v448_v48  ;;  %v463_v8 = vsel %vm462_vm7, %v970_v59, %v459_v31  ;;  %v615_v49 = vpop.permute.xlu0 %614 }
  0xd0   : > { %v532_v54 = vmul.f32 %v1260_v23, %v438_v36  ;;  %v555_v55 = vmul.f32 %v1341_v11, %v537_v38  ;;  %v560_v16 = vmul.f32 %v1258_v22, %v542_v35  ;;  %v468_v51 = vsel %vm1415_vm15, %v467_v3, %v463_v8 }
  0xd1   : > { %v539_v53 = vmul.f32 %v453_v43, %v453_v43  ;;  %v556_v14 = vmul.f32 %v1341_v11, %v538_v25  ;;  %v540_v56 = vmul.f32 %v468_v51, %v468_v51  ;;  %v535_v2 = vmul.f32 %v1256_v21, %v483_v58 }
  0xd2   : > { %v561_v61 = vadd.f32 %v555_v55, %v531_v32  ;;  %v533_v59 = vmul.f32 %v1254_v19, %v453_v43  ;;  %v536_v22 = vmul.f32 %v1256_v21, %v498_v60  ;;  %v534_v3 = vmul.f32 %v1254_v19, %v468_v51 }
  0xd3   : > { %v557_v23 = vmul.f32 %v1264_v29, %v539_v53  ;;  %v562_v4 = vadd.f32 %v556_v14, %v532_v54  ;;  %v558_v11 = vmul.f32 %v1264_v29, %v540_v56  ;;  %v565_v9 = vadd.f32 %v559_v52, %v535_v2 }
  0xd4   : > { %v579_v7 = vadd.f32 %v1284_v45, %v561_v61  ;;  %v566_v15 = vadd.f32 %v560_v16, %v536_v22  ;;  %v623_v18 = vmul.f32 %v615_v49, %v1330_v1  ;;  %v625_v19 = vmul.f32 %v619_v6, %v1330_v1 }
  0xd5   : > { %v563_v63 = vadd.f32 %v557_v23, %v533_v59  ;;  %v580_v57 = vadd.f32 %v1284_v45, %v562_v4  ;;  %v564_v26 = vadd.f32 %v558_v11, %v534_v3  ;;  %v583_v37 = vadd.f32 %v1421_v10, %v565_v9 }
  0xd6   : > { %v603_v21 = vadd.f32 %v1374_v33, %v579_v7  ;;  %v584_v29 = vadd.f32 %v1421_v10, %v566_v15  ;;  %v626_v42 = vmul.f32 %v619_v6, %v1335_v5  ;;  %v624_v1 = vmul.f32 %v615_v49, %v1335_v5 }
  0xd7   : > { %v581_v40 = vadd.f32 %v1266_v30, %v563_v63  ;;  %v604_v41 = vadd.f32 %v1388_v39, %v580_v57  ;;  %v582_v45 = vadd.f32 %v1266_v30, %v564_v26  ;;  %v607_v50 = vadd.f32 %v1429_v34, %v583_v37 }
  0xd8   : > { %v627_v33 = vadd.f32 %v1362_v24, %v603_v21  ;;  %v608_v10 = vadd.f32 %v602_v0, %v584_v29 }
  0xd9   : > { %v605_v62 = vadd.f32 %v1353_v17, %v581_v40  ;;  %v628_v39 = vadd.f32 %v1370_v27, %v604_v41  ;;  %v606_v44 = vadd.f32 %v1359_v20, %v582_v45  ;;  %v631_v58 = vadd.f32 %v625_v19, %v607_v50 }
  0xda   : > { %633 = vst [vmem:[%s291_s25] sm:$0xff] %v627_v33  ;;  %v632_v30 = vadd.f32 %v626_v42, %v608_v10 }
  0xdb   : > { %634 = vst [vmem:[%s291_s25 + $0x8] sm:$0xff] %v628_v39  ;;  %v629_v24 = vadd.f32 %v623_v18, %v605_v62  ;;  %v630_v5 = vadd.f32 %v624_v1, %v606_v44 }
  0xdc   : > { %637 = vst [vmem:[%s291_s25 + $0x20] sm:$0xff] %v631_v58 }
  0xdd   : > { %638 = vst [vmem:[%s291_s25 + $0x28] sm:$0xff] %v632_v30 }
  0xde   : > { %635 = vst [vmem:[%s291_s25 + $0x10] sm:$0xff] %v629_v24 }
  0xdf   : > { %636 = vst [vmem:[%s291_s25 + $0x18] sm:$0xff] %v630_v5 }
  0xe0   : > { %1056 = shalt.err (!%p1053_p6)
}
  0xe1   : > { %858 = dma.vmem_to_hbm [thread:$0]  (%p1208_p9), %s679_s12, 768, %s681_s21, %s645_s27, %s1125_s11, %s1125_s11, %s1126_s9  }
  0xe2 PF: > { %s695_s29 = sand.u32 1, %s1095_s18   ;;  %p866_p7 = pnand %p823_p12, %p1215_p11 }
  0xe3   : > { %s696_s14 = scalar_lea.sflag [#allocation4], %s695_s29 }
  0xe4   : > { %p867_p8 = pneg %p866_p7 }
  0xe6   : > { %1086 = dma.done.wait (%p867_p8), %s696_s14, 768  }
  0xe7   : > { %1088 = vsyncadd (%p867_p8), %s696_s14, 4294966528  ;;  %s706_s30 = scalar_lea.sflag [#allocation7], %s695_s29 }
  0xe8   : > { %1090 = dma.done.wait (%p867_p8), %s706_s30, 768  }
  0xe9   : > { %1092 = vsyncadd (%p867_p8), %s706_s30, 4294966528  ;;  %s25_s23 = sadd.s32 1, %s1115_s23   ;;  %s1563_s18 = smov %s1099_s19 }
  0xea   : > { %p22_p10 = scmp.ge.s32.totalorder %s25_s23, 4   ;;  %s1564_s19 = smov %s1103_s20 }
  0xeb   : > { %s1565_s20 = smov %s1213_s7  ;;  %s1566_s21 = smov %s1111_s22 }
  0xec   : > { %s1567_s22 = smov %s1569_s26  ;;  %24 = sbr.rel (!%p22_p10) target bundleno = 8 (0x8), region = 102 }
  0xf1   :  { %712 = vsyncpa [#allocation3], 1 }
  0xf2   :  { %714 = vsyncpa [#allocation3 + $0x1], 1 }
  0xf3   :  { %715 = vsyncpa [#allocation4], 1 }
  0xf4   :  { %717 = vsyncpa [#allocation4 + $0x1], 1 }
  0xf5   :  { %718 = vsyncpa [#allocation7], 1 }
  0xf6   :  { %720 = vsyncpa [#allocation7 + $0x1], 1 }

</bundles_post_ra>
